<compile_context>
chip_gen: v7x
topology: tpu7x:2x2x1
jax: 0.10.0
libtpu: 0.0.40
codegen_flags: <defaults>
</compile_context>

<pallas_src>
import jax
import jax.numpy as jnp
from jax.experimental import pallas as pl
from jax.experimental.pallas import tpu as pltpu

GROUP = 8  # batch rows fused per kernel row (8 * input_dim=16 -> 128 lane-dense x)


def mlp_q_kernel(x_ref, w1_ref, b1_ref, w2_ref, b2_ref, w3_ref, b3_ref, out_ref):
    # x_ref:  (tile_g, GROUP*input_dim) f32 -- GROUP batch rows per kernel row.
    # w*_ref: block-diagonal kron(I_GROUP, W) weights, VMEM-resident across the
    #         whole grid (constant index_map).
    # b*_ref: (1, GROUP*dim) f32 biases (per-layer bias tiled GROUP times).
    x = x_ref[...]

    # fc1 + relu (grouped / block-diagonal form; f32 MXU operands, f32 acc)
    h1 = jnp.dot(x, w1_ref[...], preferred_element_type=jnp.float32)
    h1 = jnp.maximum(h1 + b1_ref[...], 0.0)

    # fc2 + relu
    h2 = jnp.dot(h1, w2_ref[...], preferred_element_type=jnp.float32)
    h2 = jnp.maximum(h2 + b2_ref[...], 0.0)

    # fc3 (no activation) -> packed (tile_g, GROUP*n_actions) output rows
    out = jnp.dot(h2, w3_ref[...], preferred_element_type=jnp.float32)
    out_ref[...] = (out + b3_ref[...]).astype(out_ref.dtype)


def _choose_tile_groups(num_groups, target_groups):
    """Tile size in group-rows: sublane-aligned (multiple of 8), capped at
    `target_groups`, and chosen so the 1-D grid has >= 2 (even where cheap)
    steps -> the "parallel" batch axis actually uses both v7x TensorCores."""
    if num_groups < 16:
        return num_groups                                   # too small to split
    n_tiles = 2 * max(1, pl.cdiv(num_groups, 2 * target_groups))  # even, >= 2
    tile = pl.cdiv(num_groups, n_tiles)
    tile = pl.cdiv(tile, 8) * 8                              # (8,128) block rule
    return min(tile, num_groups)


def mlp_q_forward(state, params, *, target_tile_rows=2048):
    """state: (B, input_dim) f32.  params: pre-transposed weights/biases (f32).

    Returns (B, n_actions) f32 Q-values.
    """
    B, input_dim = state.shape
    n_actions = params["w3"].shape[1]

    # Pad the batch to a multiple of GROUP (no-op when already divisible).
    # NOTE: padded / partial-tail rows produce garbage Q-values that are simply
    # discarded below; nothing in the kernel reduces across rows, so they are
    # benign -- keep it that way if this kernel is ever extended.
    b_pad = pl.cdiv(B, GROUP) * GROUP
    x = state.astype(jnp.float32)
    if b_pad != B:
        x = jnp.pad(x, ((0, b_pad - B), (0, 0)))
    num_groups = b_pad // GROUP

    # Grouped (block-diagonal) parameters: W_g = kron(I_GROUP, W), b_g tiled.
    # ~0.4 MiB total at fc=32; built per call here, precompute once in real use.
    eye = jnp.eye(GROUP, dtype=jnp.float32)
    f32 = lambda a: a.astype(jnp.float32)
    w1g = jnp.kron(eye, f32(params["w1"]))
    w2g = jnp.kron(eye, f32(params["w2"]))
    w3g = jnp.kron(eye, f32(params["w3"]))
    b1g = jnp.tile(f32(params["b1"]).reshape(1, -1), (1, GROUP))
    b2g = jnp.tile(f32(params["b2"]).reshape(1, -1), (1, GROUP))
    b3g = jnp.tile(f32(params["b3"]).reshape(1, -1), (1, GROUP))

    # Lane-dense grouped input: (B, input_dim) -> (B/GROUP, GROUP*input_dim);
    # contiguous, so this reshape is free in the wrapper.
    x_g = x.reshape(num_groups, GROUP * input_dim)

    tile_g = _choose_tile_groups(num_groups, max(1, target_tile_rows // GROUP))
    grid = (pl.cdiv(num_groups, tile_g),)   # partial tail tile handled by Pallas

    resident = lambda a: pl.BlockSpec(a.shape, lambda i: (0,) * a.ndim)

    out_g = pl.pallas_call(
        mlp_q_kernel,
        out_shape=jax.ShapeDtypeStruct((num_groups, GROUP * n_actions), jnp.float32),
        grid=grid,
        in_specs=[
            pl.BlockSpec((tile_g, GROUP * input_dim), lambda i: (i, 0)),  # streamed
            resident(w1g), resident(b1g),
            resident(w2g), resident(b2g),
            resident(w3g), resident(b3g),
        ],
        out_specs=pl.BlockSpec((tile_g, GROUP * n_actions), lambda i: (i, 0)),
        compiler_params=pltpu.CompilerParams(
            dimension_semantics=("parallel",)),  # batch tiles across TCs on v7x
    )(x_g, w1g, b1g, w2g, b2g, w3g, b3g)

    # Free contiguous un-pack back to (B, n_actions) -- no extra HBM pass.
    actions = out_g.reshape(b_pad, n_actions)
    return actions if b_pad == B else actions[:B]


def init_params(key, input_dim, fc1_dims, fc2_dims, n_actions):
    """Deterministic init mimicking nn.Linear's U(-1/sqrt(fan_in), 1/sqrt(fan_in)).
    Weights stored as (in, out), i.e. transposed relative to PyTorch."""
    def linear(k, fan_in, fan_out):
        kw, kb = jax.random.split(k)
        bound = 1.0 / jnp.sqrt(fan_in)
        w = jax.random.uniform(kw, (fan_in, fan_out), jnp.float32, -bound, bound)
        b = jax.random.uniform(kb, (1, fan_out), jnp.float32, -bound, bound)
        return w, b

    k1, k2, k3 = jax.random.split(key, 3)
    w1, b1 = linear(k1, input_dim, fc1_dims)
    w2, b2 = linear(k2, fc1_dims, fc2_dims)
    w3, b3 = linear(k3, fc2_dims, n_actions)
    return {"w1": w1, "b1": b1, "w2": w2, "b2": b2, "w3": w3, "b3": b3}


def mlp_q_reference_f32(state, params):
    h1 = jnp.maximum(state @ params["w1"] + params["b1"], 0.0)
    h2 = jnp.maximum(h1 @ params["w2"] + params["b2"], 0.0)
    return h2 @ params["w3"] + params["b3"]


# TODO(synk): optimizer (Adam), SmoothL1Loss and .to(device) are training/host
# concerns with no forward-pass Pallas equivalent; only forward() is implemented.

if __name__ == "__main__":
    # Shapes consistent with the module: input_dims=(16,), fc1=32, fc2=32,
    # n_actions=4.  Batch of 256 -> 32 group-rows -> a 2-step "parallel" grid,
    # exercising the pipeline and the v7x two-core split.
    B, INPUT_DIM, FC1, FC2, N_ACTIONS = 256, 16, 32, 32, 4

    key = jax.random.PRNGKey(0)
    k_params, k_state = jax.random.split(key)
    params = init_params(k_params, INPUT_DIM, FC1, FC2, N_ACTIONS)
    state = jax.random.normal(k_state, (B, INPUT_DIM), jnp.float32)

    actions = mlp_q_forward(state, params)
    jax.block_until_ready(actions)
    assert actions.shape == (B, N_ACTIONS)

    ref = mlp_q_reference_f32(state, params)
    assert jnp.allclose(actions, ref, atol=1e-2, rtol=1e-2)

    print("KERNEL_OK")
</pallas_src>

<mosaic_0001>
module attributes {stable_mosaic.version = 11 : i64} {
  func.func @mlp_q_kernel(%arg0: i32, %arg1: memref<16x128xf32, #tpu.memory_space<vmem>>, %arg2: memref<128x256xf32, #tpu.memory_space<vmem>>, %arg3: memref<1x256xf32, #tpu.memory_space<vmem>>, %arg4: memref<256x256xf32, #tpu.memory_space<vmem>>, %arg5: memref<1x256xf32, #tpu.memory_space<vmem>>, %arg6: memref<256x32xf32, #tpu.memory_space<vmem>>, %arg7: memref<1x32xf32, #tpu.memory_space<vmem>>, %arg8: memref<16x32xf32, #tpu.memory_space<vmem>>) attributes {dimension_semantics = [#tpu.dimension_semantics<parallel>], iteration_bounds = array<i64: 2>, scalar_prefetch = 0 : i64, scratch_operands = 0 : i64, tpu.core_type = #tpu.core_type<tc>, window_params = [{transform_indices = @transform_0, window_bounds = array<i64: 16, 128>}, {pipeline_mode = #tpu.pipeline_mode<synchronous>, transform_indices = @transform_1, window_bounds = array<i64: 128, 256>}, {pipeline_mode = #tpu.pipeline_mode<synchronous>, transform_indices = @transform_2, window_bounds = array<i64: 1, 256>}, {pipeline_mode = #tpu.pipeline_mode<synchronous>, transform_indices = @transform_3, window_bounds = array<i64: 256, 256>}, {pipeline_mode = #tpu.pipeline_mode<synchronous>, transform_indices = @transform_4, window_bounds = array<i64: 1, 256>}, {pipeline_mode = #tpu.pipeline_mode<synchronous>, transform_indices = @transform_5, window_bounds = array<i64: 256, 32>}, {pipeline_mode = #tpu.pipeline_mode<synchronous>, transform_indices = @transform_6, window_bounds = array<i64: 1, 32>}, {transform_indices = @transform_7, window_bounds = array<i64: 16, 32>}]} {
    %c0 = arith.constant 0 : index
    %c0_0 = arith.constant 0 : index
    %0 = vector.load %arg1[%c0, %c0_0] : memref<16x128xf32, #tpu.memory_space<vmem>>, vector<16x128xf32>
    %c0_1 = arith.constant 0 : index
    %c0_2 = arith.constant 0 : index
    %1 = vector.load %arg2[%c0_1, %c0_2] : memref<128x256xf32, #tpu.memory_space<vmem>>, vector<128x256xf32>
    %cst = arith.constant dense<0.000000e+00> : vector<16x256xf32>
    %2 = tpu.matmul %0, %1, %cst {dimension_numbers = #tpu.dot_dimension_numbers<[1], [0], [0], [1], [0, 0, 1, 1], [], []>} : vector<16x128xf32>, vector<128x256xf32>, vector<16x256xf32> -> vector<16x256xf32>
    %c0_3 = arith.constant 0 : index
    %c0_4 = arith.constant 0 : index
    %3 = vector.load %arg3[%c0_3, %c0_4] : memref<1x256xf32, #tpu.memory_space<vmem>>, vector<1x256xf32>
    %4 = vector.broadcast %3 : vector<1x256xf32> to vector<16x256xf32>
    %5 = arith.addf %2, %4 : vector<16x256xf32>
    %cst_5 = arith.constant 0.000000e+00 : f32
    %6 = vector.broadcast %cst_5 : f32 to vector<16x256xf32>
    %7 = arith.maximumf %5, %6 : vector<16x256xf32>
    %c0_6 = arith.constant 0 : index
    %c0_7 = arith.constant 0 : index
    %8 = vector.load %arg4[%c0_6, %c0_7] : memref<256x256xf32, #tpu.memory_space<vmem>>, vector<256x256xf32>
    %cst_8 = arith.constant dense<0.000000e+00> : vector<16x256xf32>
    %9 = tpu.matmul %7, %8, %cst_8 {dimension_numbers = #tpu.dot_dimension_numbers<[1], [0], [0], [1], [0, 0, 1, 1], [], []>} : vector<16x256xf32>, vector<256x256xf32>, vector<16x256xf32> -> vector<16x256xf32>
    %c0_9 = arith.constant 0 : index
    %c0_10 = arith.constant 0 : index
    %10 = vector.load %arg5[%c0_9, %c0_10] : memref<1x256xf32, #tpu.memory_space<vmem>>, vector<1x256xf32>
    %11 = vector.broadcast %10 : vector<1x256xf32> to vector<16x256xf32>
    %12 = arith.addf %9, %11 : vector<16x256xf32>
    %cst_11 = arith.constant 0.000000e+00 : f32
    %13 = vector.broadcast %cst_11 : f32 to vector<16x256xf32>
    %14 = arith.maximumf %12, %13 : vector<16x256xf32>
    %c0_12 = arith.constant 0 : index
    %c0_13 = arith.constant 0 : index
    %15 = vector.load %arg6[%c0_12, %c0_13] : memref<256x32xf32, #tpu.memory_space<vmem>>, vector<256x32xf32>
    %cst_14 = arith.constant dense<0.000000e+00> : vector<16x32xf32>
    %16 = tpu.matmul %14, %15, %cst_14 {dimension_numbers = #tpu.dot_dimension_numbers<[1], [0], [0], [1], [0, 0, 1, 1], [], []>} : vector<16x256xf32>, vector<256x32xf32>, vector<16x32xf32> -> vector<16x32xf32>
    %c0_15 = arith.constant 0 : index
    %c0_16 = arith.constant 0 : index
    %17 = vector.load %arg7[%c0_15, %c0_16] : memref<1x32xf32, #tpu.memory_space<vmem>>, vector<1x32xf32>
    %18 = vector.broadcast %17 : vector<1x32xf32> to vector<16x32xf32>
    %19 = arith.addf %16, %18 : vector<16x32xf32>
    %c0_17 = arith.constant 0 : index
    %c0_18 = arith.constant 0 : index
    %20 = vector.load %arg8[%c0_17, %c0_18] : memref<16x32xf32, #tpu.memory_space<vmem>>, vector<16x32xf32>
    tpu.vector_store %arg8[%c0_17, %c0_18], %19 {strides = array<i32>} : memref<16x32xf32, #tpu.memory_space<vmem>>, vector<16x32xf32>,
    return
  }
  func.func @transform_0(%arg0: i32) -> (i32, i32) {
    %c0_i32 = arith.constant 0 : i32
    %c0_i32_0 = arith.constant 0 : i32
    return %arg0, %c0_i32 : i32, i32
  }
  func.func @transform_1(%arg0: i32) -> (i32, i32) {
    %c0_i32 = arith.constant 0 : i32
    %c0_i32_0 = arith.constant 0 : i32
    %c0_i32_1 = arith.constant 0 : i32
    return %c0_i32, %c0_i32_0 : i32, i32
  }
  func.func @transform_2(%arg0: i32) -> (i32, i32) {
    %c0_i32 = arith.constant 0 : i32
    %c0_i32_0 = arith.constant 0 : i32
    %c0_i32_1 = arith.constant 0 : i32
    return %c0_i32, %c0_i32_0 : i32, i32
  }
  func.func @transform_3(%arg0: i32) -> (i32, i32) {
    %c0_i32 = arith.constant 0 : i32
    %c0_i32_0 = arith.constant 0 : i32
    %c0_i32_1 = arith.constant 0 : i32
    return %c0_i32, %c0_i32_0 : i32, i32
  }
  func.func @transform_4(%arg0: i32) -> (i32, i32) {
    %c0_i32 = arith.constant 0 : i32
    %c0_i32_0 = arith.constant 0 : i32
    %c0_i32_1 = arith.constant 0 : i32
    return %c0_i32, %c0_i32_0 : i32, i32
  }
  func.func @transform_5(%arg0: i32) -> (i32, i32) {
    %c0_i32 = arith.constant 0 : i32
    %c0_i32_0 = arith.constant 0 : i32
    %c0_i32_1 = arith.constant 0 : i32
    return %c0_i32, %c0_i32_0 : i32, i32
  }
  func.func @transform_6(%arg0: i32) -> (i32, i32) {
    %c0_i32 = arith.constant 0 : i32
    %c0_i32_0 = arith.constant 0 : i32
    %c0_i32_1 = arith.constant 0 : i32
    return %c0_i32, %c0_i32_0 : i32, i32
  }
  func.func @transform_7(%arg0: i32) -> (i32, i32) {
    %c0_i32 = arith.constant 0 : i32
    %c0_i32_0 = arith.constant 0 : i32
    return %arg0, %c0_i32 : i32, i32
  }
}

</mosaic_0001>

<bundles_post_ra>
// kernel: tpu_custom_call.1
= control target key start
LH: loop header
LB: loop body
LE: loop exit
PB: predicated region body
PF: predicated region fallthrough
CT: control target
= control target key end

     0   :  { %12 = vsyncpa [#allocation3], 0  ;;  %s1514_s0 = inlined_call_operand.vmem [shape: f32[32,128], index: 0, kind: input, shape index: {}]   ;;  %s1515_s1 = inlined_call_operand.vmem [shape: f32[128,256], index: 1, kind: input, shape index: {}]   ;;  %s1516_s2 = inlined_call_operand.vmem [shape: f32[1,256], index: 2, kind: input, shape index: {}]   ;;  %s1517_s3 = inlined_call_operand.hbm [shape: f32[256,256], index: 3, kind: input, shape index: {}]   ;;  %s1518_s4 = inlined_call_operand.vmem [shape: f32[1,256], index: 4, kind: input, shape index: {}]   ;;  %s1519_s5 = inlined_call_operand.vmem [shape: f32[256,32], index: 5, kind: input, shape index: {}]   ;;  %s1520_s6 = inlined_call_operand.vmem [shape: f32[1,32], index: 6, kind: input, shape index: {}]   ;;  %s1521_s7 = inlined_call_operand.hbm [shape: f32[32,32], index: 7, kind: output, shape index: {}]  }
   0x1   :  { %13 = vsyncpa [#allocation4], 0 }
   0x2   :  { %15 = vsyncpa [#allocation4 + $0x1], 0  ;;  %s1164_s24 = smov 0   ;;  %s1166_s25 = smov 0  }
   0x3   :  { %s1168_s26 = smov 0   ;;  %s1170_s27 = smov 0  }
   0x4 LB: > { %s1185_s28 = sadd.s32 4294967295, %s1115_s27   ;;  %s784_s29 = sadd.s32 4294967294, %s1115_s27   ;;  %s1115_s27 = sphi %s1170_s27, %s1538_s27   ;;  %s1111_s26 = sphi %s1168_s26, %s1537_s26   ;;  %s1107_s25 = sphi %s1166_s25, %s1536_s25   ;;  %s1103_s24 = sphi %s1164_s24, %s1535_s24  }
   0x5   : > { %s1189_s30 = sadd.s32 1, %s1115_s27   ;;  %s180_s8 = sadd.s32 1, %s1111_s26 }
   0x6   : > { %s177_s9 = ssub.s32 %s1115_s27, %s1189_s30  ;;  %p190_p0 = scmp.ne.s32.totalorder %s1111_s26, %s1107_s25 }
   0x7   : > { %p178_p1 = scmp.eq.s32.totalorder %s177_s9, 0  ;;  %p191_p2 = scmp.eq.s32.totalorder %s1185_s28, 1 }
   0x8   : > { %p196_p3 = scmp.ne.s32.totalorder %s1107_s25, %s1103_s24  ;;  %p197_p4 = scmp.eq.s32.totalorder %s784_s29, 1 }
   0x9   : > { %s1200_s10 = scalar_select %p178_p1, %s1111_s26, %s180_s8  }
   0xa   : > { %p1202_p5 = por %p191_p2, %p190_p0  ;;  %p1206_p6 = por %p197_p4, %p196_p3 }
   0xb   : > { %p785_p7 = scmp.ge.s32.totalorder %s1115_s27, 1  ;;  %p204_p8 = scmp.lt.s32.totalorder %s1115_s27, 3 }
   0xc   : > { %s1525_s11 = scalar_select %p1202_p5, 1, 0 }
   0xd   : > { %s1526_s12 = scalar_select %p1206_p6, 1, 0 }
   0xe   : > { %p1522_p9 = scmp.eq.s32.totalorder %s1185_s28, 0  ;;  %p1213_p10 = pnand %p785_p7, %p204_p8 }
   0xf   : > { %s1117_s14 = smov [#allocation2]   ;;  %s1021_s19 = scalar_lea.hbm %s1517_s3, 8192 }
  0x10   : > { %s1527_s13 = scalar_select %p1213_p10, 1, 0 }
  0x11   : > { %s222_s15 = sshll.u32 %s1117_s14, 4  ;;  %p972_p11 = pneg %p1213_p10  ;;  %s223_s15 = int_to_ptr.vmem [resolvable:$true] %s222_s15 }
  0x12   : > { %p1022_p13 = scmp.ne.s32.totalorder %s1517_s3, %s1021_s19  ;;  %p1028_p3 = scmp.lt.u32.totalorder %s1021_s19, %s1517_s3 }
  0x13   : > { %p1221_p12 = pnand %p1522_p9, %p972_p11 }
  0x15   : > { %p1023_p0 = pneg %p1221_p12 }
  0x17   : > { %p1024_p1 = pnand %p1023_p0, %p1022_p13 }
  0x19   : > { %p1025_p2 = pneg %p1024_p1 }
  0x1b   : > { %p1030_p4 = pnand %p1028_p3, %p1025_p2 }
  0x1d   : > { %1033 = shalt.err (!%p1030_p4)
}
  0x1e   : > { %s1034_s29 = scalar_lea.vmem %s223_s15, 8192  ;;  %p1042_p9 = scmp.lt.s32.totalorder %s223_s15, %s223_s15 }
  0x1f   : > { %p1035_p7 = scmp.ne.s32.totalorder %s223_s15, %s1034_s29  ;;  %p1043_p6 = scmp.lt.s32.totalorder %s1034_s29, %s1034_s29 }
  0x21   : > { %p1037_p8 = pnand %p1035_p7, %p1023_p0  ;;  %p1044_p5 = por %p1043_p6, %p1042_p9 }
  0x23   : > { %p1038_p11 = pneg %p1037_p8 }
  0x25   : > { %p1045_p10 = pnand %p1044_p5, %p1038_p11 }
  0x27   : > { %1048 = shalt.err (!%p1045_p10)
}
  0x28   : > { %s1118_s8 = smov 256   ;;  %s1119_s9 = smov 16  }
  0x29   : > { %975 = dma.hbm_to_vmem [thread:$0]  (!%p1221_p12), %s1517_s3, 8192, %s223_s15, [#allocation3], %s1118_s8, %s1118_s8, %s1119_s9  }
  0x2a   : > { %p1529_p13 = scmp.ne.s32.totalorder %s1527_s13, 0 }
  0x2b   : > { %p1530_p1 = scmp.eq.s32.totalorder (!%p1529_p13), %s1185_s28, 0 }
  0x2c   : > { %256 = sbr.rel (%p1529_p13) target bundleno = 759 (0x2f7), region = 48 }
  0x33   : > { %1094 = dma.done.wait (%p1530_p1), [#allocation3], 8192   ;;  %p1531_p0 = pmov %p1530_p1 }
  0x34   : > { %v1120_v0 = vmov 0.0   ;;  %v298_v1 = vld [vmem:[%s1515_s1 + $0x8] sm:$0xff]  ;;  %v300_v2 = vld [vmem:[%s1515_s1 + $0x18] sm:$0xff]  ;;  %v297_v3 = vld [vmem:[%s1515_s1] sm:$0xff]  ;;  %s791_s16 = sshll.u32 %s1185_s28, 1  ;;  %s285_s17 = sand.u32 1, %s1107_s25  }
  0x35   : > { %1096 = vsyncadd (%p1531_p0), [#allocation3], 4294959104  ;;  %405 = vmatprep.mubr.f32.mxu0 %v1120_v0  ;;  %v838_v4 = vpack.c.bf16 %v300_v2, %v298_v1  ;;  %v299_v5 = vld [vmem:[%s1515_s1 + $0x10] sm:$0xff]  ;;  %v302_v6 = vld [vmem:[%s1515_s1 + $0x28] sm:$0xff]  ;;  %p1329_p5 = scmp.lt.s32.totalorder %s791_s16, 3  ;;  %vm693_vm0 = vcmask 261120  }
  0x36   : > { %v304_v7 = vld [vmem:[%s1515_s1 + $0x38] sm:$0xff]  ;;  %v840_v8 = vpack.c.bf16 %v299_v5, %v297_v3  ;;  %v301_v10 = vld [vmem:[%s1515_s1 + $0x20] sm:$0xff]  ;;  %v303_v11 = vld [vmem:[%s1515_s1 + $0x30] sm:$0xff]  ;;  %s799_s20 = sshll.u32 %s1185_s28, 8  ;;  %s1473_s29 = scalar_lea.sflag [#allocation4], %s285_s17 }
  0x37   : > { %v842_v9 = vpack.c.bf16 %v304_v7, %v302_v6  ;;  %v306_v12 = vld [vmem:[%s1515_s1 + $0x48] sm:$0xff]  ;;  %839 = vmatprep.subr.bf16.mxu0 %v838_v4  ;;  %v308_v13 = vld [vmem:[%s1515_s1 + $0x58] sm:$0xff]  ;;  %v844_v14 = vpack.c.bf16 %v303_v11, %v301_v10  ;;  %v305_v16 = vld [vmem:[%s1515_s1 + $0x40] sm:$0xff]  ;;  %s1540_s16 = smov (!%p1329_p5, %s791_s16), 3  ;;  %s1469_s23 = scalar_lea.hbm %s1521_s7, %s799_s20 }
  0x38   : > { %841 = vmatpush1.bf16.msra.mxu0 %v840_v8  ;;  %v846_v15 = vpack.c.bf16 %v308_v13, %v306_v12  ;;  %v307_v17 = vld [vmem:[%s1515_s1 + $0x50] sm:$0xff]  ;;  %v310_v18 = vld [vmem:[%s1515_s1 + $0x68] sm:$0xff]  ;;  %v312_v19 = vld [vmem:[%s1515_s1 + $0x78] sm:$0xff]  ;;  %s792_s9 = sshll.u32 %s1540_s16, 3  ;;  %p1533_p9 = scmp.ne.s32.totalorder %s1525_s11, 0 }
  0x39   : > { %843 = vmatprep.subr.bf16.mxu0 %v842_v9  ;;  %v848_v20 = vpack.c.bf16 %v307_v17, %v305_v16  ;;  %v850_v21 = vpack.c.bf16 %v312_v19, %v310_v18  ;;  %v309_v22 = vld [vmem:[%s1515_s1 + $0x60] sm:$0xff]  ;;  %v311_v23 = vld [vmem:[%s1515_s1 + $0x70] sm:$0xff]  ;;  %v314_v24 = vld [vmem:[%s1515_s1 + $0x88] sm:$0xff]  ;;  %s292_s18 = scalar_lea.vmem %s1514_s0, %s792_s9  ;;  %s1121_s8 = smov [#allocation5]  }
  0x3a   : > { %v316_v25 = vld [vmem:[%s1515_s1 + $0x98] sm:$0xff]  ;;  %v313_v26 = vld [vmem:[%s1515_s1 + $0x80] sm:$0xff]  ;;  %v315_v27 = vld [vmem:[%s1515_s1 + $0x90] sm:$0xff]  ;;  %v852_v30 = vpack.c.bf16 %v311_v23, %v309_v22  ;;  %s1053_s9 = sshll.u32 %s1121_s8, 4  ;;  %s1054_s9 = int_to_ptr.vmem [resolvable:$false] %s1053_s9 }
  0x3b   : > { %v423_v28 = vld [vmem:[#allocation2 + $0x8] sm:$0xff]  ;;  %v425_v29 = vld [vmem:[#allocation2 + $0x18] sm:$0xff]  ;;  %v422_v33 = vld [vmem:[#allocation2] sm:$0xff]  ;;  %v854_v36 = vpack.c.bf16 %v316_v25, %v314_v24  ;;  %v856_v46 = vpack.c.bf16 %v315_v27, %v313_v26  ;;  %s1055_s14 = scalar_lea.vmem %s1054_s9, 512 }
  0x3c   : > { %845 = vmatpush1.bf16.msra.mxu0 %v844_v14  ;;  %v318_v31 = vld [vmem:[%s1515_s1 + $0xa8] sm:$0xff]  ;;  %v870_v32 = vpack.c.bf16 %v425_v29, %v423_v28  ;;  %v424_v34 = vld [vmem:[#allocation2 + $0x10] sm:$0xff]  ;;  %v429_v38 = vld [vmem:[#allocation2 + $0x38] sm:$0xff] }
  0x3d   : > { %847 = vmatprep.subr.bf16.mxu0 %v846_v15  ;;  %v427_v35 = vld [vmem:[#allocation2 + $0x28] sm:$0xff]  ;;  %v872_v37 = vpack.c.bf16 %v424_v34, %v422_v33  ;;  %v426_v39 = vld [vmem:[#allocation2 + $0x20] sm:$0xff]  ;;  %v428_v40 = vld [vmem:[#allocation2 + $0x30] sm:$0xff] }
  0x3e   : > { %v320_v41 = vld [vmem:[%s1515_s1 + $0xb8] sm:$0xff]  ;;  %871 = vmatprep.subr.bf16.mxu1 %v870_v32  ;;  %v874_v42 = vpack.c.bf16 %v429_v38, %v427_v35  ;;  %v431_v43 = vld [vmem:[#allocation2 + $0x48] sm:$0xff]  ;;  %v876_v45 = vpack.c.bf16 %v428_v40, %v426_v39  ;;  %v317_v47 = vld [vmem:[%s1515_s1 + $0xa0] sm:$0xff] }
  0x3f   : > { %v433_v44 = vld [vmem:[#allocation2 + $0x58] sm:$0xff]  ;;  %873 = vmatpush1.bf16.msra.mxu1 %v872_v37  ;;  %v430_v49 = vld [vmem:[#allocation2 + $0x40] sm:$0xff]  ;;  %v432_v50 = vld [vmem:[#allocation2 + $0x50] sm:$0xff]  ;;  %v858_v51 = vpack.c.bf16 %v320_v41, %v318_v31 }
  0x40   : > { %849 = vmatpush1.bf16.msra.mxu0 %v848_v20  ;;  %875 = vmatprep.subr.bf16.mxu1 %v874_v42  ;;  %v878_v48 = vpack.c.bf16 %v433_v44, %v431_v43  ;;  %v319_v52 = vld [vmem:[%s1515_s1 + $0xb0] sm:$0xff]  ;;  %v435_v53 = vld [vmem:[#allocation2 + $0x68] sm:$0xff]  ;;  %v437_v54 = vld [vmem:[#allocation2 + $0x78] sm:$0xff]  ;;  %v880_v57 = vpack.c.bf16 %v432_v50, %v430_v49 }
  0x41   : > { %851 = vmatprep.subr.bf16.mxu0 %v850_v21  ;;  %v322_v55 = vld [vmem:[%s1515_s1 + $0xc8] sm:$0xff]  ;;  %v324_v56 = vld [vmem:[%s1515_s1 + $0xd8] sm:$0xff]  ;;  %v860_v58 = vpack.c.bf16 %v319_v52, %v317_v47  ;;  %v321_v59 = vld [vmem:[%s1515_s1 + $0xc0] sm:$0xff]  ;;  %v882_v60 = vpack.c.bf16 %v437_v54, %v435_v53 }
  0x42   : > { %v434_v61 = vld [vmem:[#allocation2 + $0x60] sm:$0xff]  ;;  %v436_v62 = vld [vmem:[#allocation2 + $0x70] sm:$0xff]  ;;  %v862_v63 = vpack.c.bf16 %v324_v56, %v322_v55  ;;  %v439_v2 = vld [vmem:[#allocation2 + $0x88] sm:$0xff] }
  0x43   : > { %877 = vmatpush1.bf16.msra.mxu1 %v876_v45  ;;  %v323_v1 = vld [vmem:[%s1515_s1 + $0xd0] sm:$0xff]  ;;  %v441_v3 = vld [vmem:[#allocation2 + $0x98] sm:$0xff]  ;;  %v326_v4 = vld [vmem:[%s1515_s1 + $0xe8] sm:$0xff]  ;;  %v884_v6 = vpack.c.bf16 %v436_v62, %v434_v61 }
  0x44   : > { %853 = vmatpush1.bf16.msra.mxu0 %v852_v30  ;;  %879 = vmatprep.subr.bf16.mxu1 %v878_v48  ;;  %v328_v5 = vld [vmem:[%s1515_s1 + $0xf8] sm:$0xff]  ;;  %v864_v7 = vpack.c.bf16 %v323_v1, %v321_v59  ;;  %v325_v8 = vld [vmem:[%s1515_s1 + $0xe0] sm:$0xff]  ;;  %v886_v9 = vpack.c.bf16 %v441_v3, %v439_v2  ;;  %v440_v11 = vld [vmem:[#allocation2 + $0x90] sm:$0xff] }
  0x45   : > { %855 = vmatprep.subr.bf16.mxu0 %v854_v36  ;;  %v438_v10 = vld [vmem:[#allocation2 + $0x80] sm:$0xff]  ;;  %v866_v12 = vpack.c.bf16 %v328_v5, %v326_v4  ;;  %v327_v13 = vld [vmem:[%s1515_s1 + $0xf0] sm:$0xff]  ;;  %v443_v14 = vld [vmem:[#allocation2 + $0xa8] sm:$0xff] }
  0x46   : > { %v445_v15 = vld [vmem:[#allocation2 + $0xb8] sm:$0xff]  ;;  %v888_v16 = vpack.c.bf16 %v440_v11, %v438_v10  ;;  %v868_v17 = vpack.c.bf16 %v327_v13, %v325_v8  ;;  %v442_v19 = vld [vmem:[#allocation2 + $0xa0] sm:$0xff]  ;;  %v444_v20 = vld [vmem:[#allocation2 + $0xb0] sm:$0xff] }
  0x47   : > { %881 = vmatpush1.bf16.msra.mxu1 %v880_v57  ;;  %v890_v18 = vpack.c.bf16 %v445_v15, %v443_v14  ;;  %v447_v21 = vld [vmem:[#allocation2 + $0xc8] sm:$0xff]  ;;  %v449_v22 = vld [vmem:[#allocation2 + $0xd8] sm:$0xff]  ;;  %v892_v23 = vpack.c.bf16 %v444_v20, %v442_v19  ;;  %v295_v24 = vld [vmem:[%s292_s18] sm:$0xff] }
  0x48   : > { %857 = vmatpush1.bf16.msra.mxu0 %v856_v46  ;;  %883 = vmatprep.subr.bf16.mxu1 %v882_v60  ;;  %v894_v25 = vpack.c.bf16 %v449_v22, %v447_v21  ;;  %v446_v26 = vld [vmem:[#allocation2 + $0xc0] sm:$0xff]  ;;  %v448_v27 = vld [vmem:[#allocation2 + $0xd0] sm:$0xff]  ;;  %v451_v28 = vld [vmem:[#allocation2 + $0xe8] sm:$0xff] }
  0x49   : > { %859 = vmatprep.subr.bf16.mxu0 %v858_v51  ;;  %v453_v29 = vld [vmem:[#allocation2 + $0xf8] sm:$0xff]  ;;  %v896_v30 = vpack.c.bf16 %v448_v27, %v446_v26  ;;  %v296_v31 = vld [vmem:[%s292_s18 + $0x8] sm:$0xff]  ;;  %v450_v33 = vld [vmem:[#allocation2 + $0xe0] sm:$0xff]  ;;  %s790_s18 = sshll.u32 %s285_s17, 4 }
  0x4a   : > { %v898_v32 = vpack.c.bf16 %v453_v29, %v451_v28  ;;  %v452_v34 = vld [vmem:[#allocation2 + $0xf0] sm:$0xff]  ;;  %v455_v35 = vld [vmem:[#allocation2 + $0x108] sm:$0xff]  ;;  %v457_v36 = vld [vmem:[#allocation2 + $0x118] sm:$0xff]  ;;  %s287_s15 = scalar_lea.vmem [#allocation5], %s790_s18 }
  0x4b   : > { %885 = vmatpush1.bf16.msra.mxu1 %v884_v6  ;;  %v900_v37 = vpack.c.bf16 %v452_v34, %v450_v33  ;;  %v902_v38 = vpack.c.bf16 %v457_v36, %v455_v35  ;;  %v454_v39 = vld [vmem:[#allocation2 + $0x100] sm:$0xff]  ;;  %v456_v40 = vld [vmem:[#allocation2 + $0x110] sm:$0xff]  ;;  %v459_v41 = vld [vmem:[#allocation2 + $0x128] sm:$0xff]  ;;  %s710_s13 = sshll.u32 %s287_s15, 4  ;;  %s1471_s13 = int_to_ptr.vmem [resolvable:$true] %s710_s13 }
  0x4c   : > { %861 = vmatpush1.bf16.msra.mxu0 %v860_v58  ;;  %887 = vmatprep.subr.bf16.mxu1 %v886_v9  ;;  %v461_v42 = vld [vmem:[#allocation2 + $0x138] sm:$0xff]  ;;  %v904_v43 = vpack.c.bf16 %v456_v40, %v454_v39  ;;  %v458_v44 = vld [vmem:[#allocation2 + $0x120] sm:$0xff]  ;;  %v460_v45 = vld [vmem:[#allocation2 + $0x130] sm:$0xff]  ;;  %s1049_s28 = scalar_lea.vmem %s1471_s13, 256  ;;  %p1056_p2 = scmp.lt.s32.totalorder %s1471_s13, %s1054_s9 }
  0x4d   : > { %863 = vmatprep.subr.bf16.mxu0 %v862_v63  ;;  %v463_v46 = vld [vmem:[#allocation2 + $0x148] sm:$0xff]  ;;  %v465_v47 = vld [vmem:[#allocation2 + $0x158] sm:$0xff]  ;;  %v908_v48 = vpack.c.bf16 %v460_v45, %v458_v44  ;;  %v462_v50 = vld [vmem:[#allocation2 + $0x140] sm:$0xff]  ;;  %p1050_p6 = scmp.ne.s32.totalorder %s1471_s13, %s1049_s28  ;;  %p1057_p3 = scmp.lt.s32.totalorder %s1055_s14, %s1049_s28 }
  0x4e   : > { %v910_v49 = vpack.c.bf16 %v465_v47, %v463_v46  ;;  %v464_v51 = vld [vmem:[#allocation2 + $0x150] sm:$0xff]  ;;  %v467_v52 = vld [vmem:[#allocation2 + $0x168] sm:$0xff]  ;;  %v469_v53 = vld [vmem:[#allocation2 + $0x178] sm:$0xff] }
  0x4f   : > { %889 = vmatpush1.bf16.msra.mxu1 %v888_v16  ;;  %v912_v54 = vpack.c.bf16 %v464_v51, %v462_v50  ;;  %v914_v55 = vpack.c.bf16 %v469_v53, %v467_v52  ;;  %v466_v56 = vld [vmem:[#allocation2 + $0x160] sm:$0xff]  ;;  %v468_v57 = vld [vmem:[#allocation2 + $0x170] sm:$0xff]  ;;  %v471_v58 = vld [vmem:[#allocation2 + $0x188] sm:$0xff]  ;;  %p1051_p10 = pnand %p1050_p6, %p1533_p9  ;;  %p1058_p4 = por %p1057_p3, %p1056_p2 }
  0x50   : > { %865 = vmatpush1.bf16.msra.mxu0 %v864_v7  ;;  %891 = vmatprep.subr.bf16.mxu1 %v890_v18  ;;  %v473_v59 = vld [vmem:[#allocation2 + $0x198] sm:$0xff]  ;;  %v916_v60 = vpack.c.bf16 %v468_v57, %v466_v56  ;;  %v470_v62 = vld [vmem:[#allocation2 + $0x180] sm:$0xff]  ;;  %v472_v63 = vld [vmem:[#allocation2 + $0x190] sm:$0xff] }
  0x51   : > { %867 = vmatprep.subr.bf16.mxu0 %v866_v12  ;;  %v918_v61 = vpack.c.bf16 %v473_v59, %v471_v58  ;;  %v475_v1 = vld [vmem:[#allocation2 + $0x1a8] sm:$0xff]  ;;  %v477_v2 = vld [vmem:[#allocation2 + $0x1b8] sm:$0xff]  ;;  %v920_v3 = vpack.c.bf16 %v472_v63, %v470_v62  ;;  %v474_v5 = vld [vmem:[#allocation2 + $0x1a0] sm:$0xff]  ;;  %v331_v58 = vlaneseq  ;;  %p1052_p12 = pneg %p1051_p10 }
  0x52   : > { %v922_v4 = vpack.c.bf16 %v477_v2, %v475_v1  ;;  %v476_v6 = vld [vmem:[#allocation2 + $0x1b0] sm:$0xff]  ;;  %v479_v7 = vld [vmem:[#allocation2 + $0x1c8] sm:$0xff]  ;;  %v481_v8 = vld [vmem:[#allocation2 + $0x1d8] sm:$0xff] }
  0x53   : > { %893 = vmatpush1.bf16.msra.mxu1 %v892_v23  ;;  %v924_v9 = vpack.c.bf16 %v476_v6, %v474_v5  ;;  %v926_v10 = vpack.c.bf16 %v481_v8, %v479_v7  ;;  %v478_v11 = vld [vmem:[#allocation2 + $0x1c0] sm:$0xff]  ;;  %v480_v12 = vld [vmem:[#allocation2 + $0x1d0] sm:$0xff]  ;;  %v483_v14 = vld [vmem:[#allocation2 + $0x1e8] sm:$0xff]  ;;  %v332_v59 = vshrl.u32 %v331_v58, 7  ;;  %p1059_p7 = pnand %p1058_p4, %p1052_p12 }
  0x54   : > { %869 = vmatpush1.bf16.msra.mxu0 %v868_v17  ;;  %895 = vmatprep.subr.bf16.mxu1 %v894_v25  ;;  %v928_v13 = vpack.c.bf16 %v480_v12, %v478_v11  ;;  %v485_v15 = vld [vmem:[#allocation2 + $0x1f8] sm:$0xff]  ;;  %v482_v17 = vld [vmem:[#allocation2 + $0x1e0] sm:$0xff]  ;;  %v484_v18 = vld [vmem:[#allocation2 + $0x1f0] sm:$0xff] }
  0x55   : > { %v930_v16 = vpack.c.bf16 %v485_v15, %v483_v14  ;;  %v932_v19 = vpack.c.bf16 %v484_v18, %v482_v17  ;;  %v595_v20 = vld [vmem:[%s1519_s5 + $0x80] sm:$0xff]  ;;  %v596_v21 = vld [vmem:[%s1519_s5 + $0x88] sm:$0xff]  ;;  %v597_v25 = vld [vmem:[%s1519_s5 + $0x90] sm:$0xff]  ;;  %v337_v62 = vsub.s32 1, %v332_v59 }
  0x56   : > { %v579_v22 = vld [vmem:[%s1519_s5] sm:$0xff]  ;;  %v934_v23 = vpack.c.bf16 %v596_v21, %v595_v20  ;;  %v598_v26 = vld [vmem:[%s1519_s5 + $0x98] sm:$0xff]  ;;  %v581_v29 = vld [vmem:[%s1519_s5 + $0x10] sm:$0xff] }
  0x57   : > { %406 = vmatmul.mubr.f32.vlgmr.msra.gmra.mrb[0].mxu0 %v295_v24  ;;  %897 = vmatpush1.bf16.msra.mxu1 %v896_v30  ;;  %v580_v24 = vld [vmem:[%s1519_s5 + $0x8] sm:$0xff]  ;;  %v938_v28 = vpack.c.bf16 %v598_v26, %v597_v25  ;;  %v582_v30 = vld [vmem:[%s1519_s5 + $0x18] sm:$0xff]  ;;  %v583_v35 = vld [vmem:[%s1519_s5 + $0x20] sm:$0xff] }
  0x58   : > { %411 = vmatprep.mubr.f32.mxu0 %v1120_v0  ;;  %899 = vmatprep.subr.bf16.mxu1 %v898_v32  ;;  %v906_v0 = vpack.c.bf16 %v461_v42, %v459_v41  ;;  %v936_v27 = vpack.c.bf16 %v580_v24, %v579_v22  ;;  %v600_v32 = vld [vmem:[%s1519_s5 + $0xa8] sm:$0xff]  ;;  %v940_v33 = vpack.c.bf16 %v582_v30, %v581_v29  ;;  %v585_v41 = vld [vmem:[%s1519_s5 + $0x30] sm:$0xff]  ;;  %v586_v42 = vld [vmem:[%s1519_s5 + $0x38] sm:$0xff] }
  0x59   : > { %935 = vmatprep.subr.bf16.mxu0 %v934_v23  ;;  %v584_v36 = vld [vmem:[%s1519_s5 + $0x28] sm:$0xff]  ;;  %v948_v44 = vpack.c.bf16 %v586_v42, %v585_v41  ;;  %v587_v46 = vld [vmem:[%s1519_s5 + $0x40] sm:$0xff]  ;;  %v589_v52 = vld [vmem:[%s1519_s5 + $0x50] sm:$0xff] }
  0x5a   : > { %937 = vmatpush3.bf16.msra.mxu0 %v936_v27  ;;  %v944_v39 = vpack.c.bf16 %v584_v36, %v583_v35  ;;  %v588_v47 = vld [vmem:[%s1519_s5 + $0x48] sm:$0xff]  ;;  %v590_v53 = vld [vmem:[%s1519_s5 + $0x58] sm:$0xff]  ;;  %v591_v14 = vld [vmem:[%s1519_s5 + $0x60] sm:$0xff] }
  0x5b   : > { %412 = vmatmul.mubr.f32.gmra.mrb[2].mxu0 %v296_v31  ;;  %901 = vmatpush1.bf16.msra.mxu1 %v900_v37  ;;  %v599_v31 = vld [vmem:[%s1519_s5 + $0xa0] sm:$0xff]  ;;  %v601_v37 = vld [vmem:[%s1519_s5 + $0xb0] sm:$0xff]  ;;  %v952_v50 = vpack.c.bf16 %v588_v47, %v587_v46  ;;  %v956_v56 = vpack.c.bf16 %v590_v53, %v589_v52  ;;  %v592_v15 = vld [vmem:[%s1519_s5 + $0x68] sm:$0xff] }
  0x5c   : > { %903 = vmatprep.subr.bf16.mxu1 %v902_v38  ;;  %939 = vmatprep.subr.bf16.mxu0 %v938_v28  ;;  %v942_v34 = vpack.c.bf16 %v600_v32, %v599_v31  ;;  %v602_v38 = vld [vmem:[%s1519_s5 + $0xb8] sm:$0xff]  ;;  %v609_v17 = vld [vmem:[%s1519_s5 + $0xf0] sm:$0xff]  ;;  %v486_v23 = vld [vmem:[%s1518_s4] sm:$0x3] }
  0x5d   : > { %v946_v40 = vpack.c.bf16 %v602_v38, %v601_v37  ;;  %v610_v18 = vld [vmem:[%s1519_s5 + $0xf8] sm:$0xff]  ;;  %v593_v20 = vld [vmem:[%s1519_s5 + $0x70] sm:$0xff]  ;;  %v495_v25 = vrot.slane %v486_v23, %v337_v62 }
  0x5e   : > { %941 = vmatpush3.bf16.msra.mxu0 %v940_v33  ;;  %v594_v21 = vld [vmem:[%s1519_s5 + $0x78] sm:$0xff] }
  0x5f   : > { %905 = vmatpush1.bf16.msra.mxu1 %v904_v43  ;;  %943 = vmatprep.subr.bf16.mxu0 %v942_v34  ;;  %v603_v43 = vld [vmem:[%s1519_s5 + $0xc0] sm:$0xff]  ;;  %v964_v22 = vpack.c.bf16 %v594_v21, %v593_v20 }
  0x60   : > { %907 = vmatprep.subr.bf16.mxu1 %v906_v0  ;;  %v604_v0 = vld [vmem:[%s1519_s5 + $0xc8] sm:$0xff] }
  0x61   : > { %v950_v45 = vpack.c.bf16 %v604_v0, %v603_v43 }
  0x62   : > { %945 = vmatpush3.bf16.msra.mxu0 %v944_v39  ;;  %v793_v39 = vld [vmem:[%s1520_s6] ss:$0 sm:$0xff] }
  0x63   : > { %909 = vmatpush1.bf16.msra.mxu1 %v908_v48  ;;  %947 = vmatprep.subr.bf16.mxu0 %v946_v40  ;;  %v605_v48 = vld [vmem:[%s1519_s5 + $0xd0] sm:$0xff] }
  0x64   : > { %911 = vmatprep.subr.bf16.mxu1 %v910_v49  ;;  %v606_v49 = vld [vmem:[%s1519_s5 + $0xd8] sm:$0xff] }
  0x65   : > { %v954_v51 = vpack.c.bf16 %v606_v49, %v605_v48 }
  0x66   : > { %949 = vmatpush3.bf16.msra.mxu0 %v948_v44 }
  0x67   : > { %913 = vmatpush1.bf16.msra.mxu1 %v912_v54  ;;  %951 = vmatprep.subr.bf16.mxu0 %v950_v45  ;;  %v607_v54 = vld [vmem:[%s1519_s5 + $0xe0] sm:$0xff] }
  0x68   : > { %915 = vmatprep.subr.bf16.mxu1 %v914_v55  ;;  %v608_v55 = vld [vmem:[%s1519_s5 + $0xe8] sm:$0xff] }
  0x69   : > { %v958_v57 = vpack.c.bf16 %v608_v55, %v607_v54 }
  0x6a   : > { %953 = vmatpush3.bf16.msra.mxu0 %v952_v50 }
  0x6b   : > { %917 = vmatpush1.bf16.msra.mxu1 %v916_v60  ;;  %955 = vmatprep.subr.bf16.mxu0 %v954_v51  ;;  %v333_v60 = vsub.s32 0, %v332_v59 }
  0x6c   : > { %919 = vmatprep.subr.bf16.mxu1 %v918_v61  ;;  %v329_v61 = vld [vmem:[%s1516_s2] sm:$0x3] }
  0x6d   : > { %v334_v63 = vrot.slane %v329_v61, %v333_v60  ;;  %v338_v1 = vrot.slane %v329_v61, %v337_v62  ;;  %v491_v24 = vrot.slane %v486_v23, %v333_v60 }
  0x6e   : > { %957 = vmatpush3.bf16.msra.mxu0 %v956_v56 }
  0x6f   : > { %921 = vmatpush1.bf16.msra.mxu1 %v920_v3  ;;  %959 = vmatprep.subr.bf16.mxu0 %v958_v57 }
  0x70   : > { %923 = vmatprep.subr.bf16.mxu1 %v922_v4 }
  0x73   : > { %925 = vmatpush1.bf16.msra.mxu1 %v924_v9 }
  0x74   : > { %927 = vmatprep.subr.bf16.mxu1 %v926_v10 }
  0x77   : > { %929 = vmatpush1.bf16.msra.mxu1 %v928_v13 }
  0x78   : > { %931 = vmatprep.subr.bf16.mxu1 %v930_v16  ;;  %v960_v16 = vpack.c.bf16 %v592_v15, %v591_v14 }
  0x7a   : > { %961 = vmatpush3.bf16.msra.mxu0 %v960_v16 }
  0x7b   : > { %933 = vmatpush1.bf16.msra.mxu1 %v932_v19  ;;  %v962_v19 = vpack.c.bf16 %v610_v18, %v609_v17 }
  0x7d   : > { %963 = vmatprep.subr.bf16.mxu0 %v962_v19 }
  0x7e   : > { %965 = vmatpush3.bf16.msra.mxu0 %v964_v22 }
 0x12a   : > { %v407_v2 = vpop.f32.mrb[0].mxu0 }
 0x12b   : > { %v408_v3 = vadd.f32 %v407_v2, %v334_v63  ;;  %v409_v4 = vpop.f32.mrb[1].mxu0 }
 0x12c   : > { %v410_v5 = vadd.f32 %v409_v4, %v338_v1 }
 0x12d   : > { %v418_v8 = vmax.f32 %v408_v3, 0.0 }
 0x12e   : > { %v413_v6 = vpop.f32.mrb[2].mxu0  ;;  %v419_v7 = vmax.f32 %v410_v5, 0.0 }
 0x12f   : > { %v414_v9 = vadd.f32 %v413_v6, %v334_v63  ;;  %v415_v10 = vpop.f32.mrb[3].mxu0 }
 0x130   : > { %v416_v11 = vadd.f32 %v415_v10, %v338_v1  ;;  %562 = vmatprep.mubr.f32.mxu1 %v419_v7 }
 0x131   : > { %563 = vmatmul.mubr.f32.vlgmr.msra.gmra.mrb[0].mxu1 %v418_v8  ;;  %v420_v13 = vmax.f32 %v414_v9, 0.0 }
 0x132   : > { %v421_v12 = vmax.f32 %v416_v11, 0.0 }
 0x134   : > { %568 = vmatprep.mubr.f32.mxu1 %v421_v12 }
 0x135   : > { %569 = vmatmul.mubr.f32.gmra.mrb[2].mxu1 %v420_v13 }
 0x204   : > { %v564_v26 = vpop.f32.mrb[0].mxu1 }
 0x205   : > { %v565_v27 = vadd.f32 %v564_v26, %v491_v24  ;;  %v566_v28 = vpop.f32.mrb[1].mxu1 }
 0x206   : > { %v567_v29 = vadd.f32 %v566_v28, %v495_v25 }
 0x207   : > { %v575_v32 = vmax.f32 %v565_v27, 0.0 }
 0x208   : > { %v576_v30 = vmax.f32 %v567_v29, 0.0  ;;  %v570_v31 = vpop.f32.mrb[2].mxu1 }
 0x209   : > { %v571_v33 = vadd.f32 %v570_v31, %v491_v24  ;;  %v572_v34 = vpop.f32.mrb[3].mxu1 }
 0x20a   : > { %v573_v35 = vadd.f32 %v572_v34, %v495_v25  ;;  %682 = vmatprep.mubr.f32.mxu0 %v576_v30 }
 0x20b   : > { %683 = vmatmul.mubr.f32.vlgmr.msra.gmra.mrb[4].mxu0 %v575_v32  ;;  %v577_v37 = vmax.f32 %v571_v33, 0.0 }
 0x20c   : > { %v578_v36 = vmax.f32 %v573_v35, 0.0 }
 0x20e   : > { %687 = vmatprep.mubr.f32.mxu0 %v578_v36 }
 0x20f   : > { %688 = vmatmul.mubr.f32.gmra.mrb[6].mxu0 %v577_v37 }
 0x2de   : > { %v832_v38 = vpop.f32.mrb[4].mxu0 }
 0x2df   : > { %v833_v40 = vpop.f32.mrb[5].mxu0 }
 0x2e0   : > { %v834_v41 = vadd.f32 %v833_v40, %v832_v38 }
 0x2e2   : > { %v685_v42 = vadd.f32 %v834_v41, %v793_v39  ;;  %v835_v43 = vpop.f32.mrb[6].mxu0 }
 0x2e3   : > { %v836_v0 = vpop.f32.mrb[7].mxu0 }
 0x2e4   : > { %694 = vst.msk [vmem:[%s287_s15] sm:$0xff] %vm693_vm0, %v685_v42  ;;  %v837_v44 = vadd.f32 %v836_v0, %v835_v43 }
 0x2e6   : > { %v690_v45 = vadd.f32 %v837_v44, %v793_v39 }
 0x2e8   : > { %695 = vst.msk [vmem:[%s287_s15 + $0x8] sm:$0xff] %vm693_vm0, %v690_v45 }
 0x2e9   : > { %1062 = shalt.err (!%p1059_p7)
}
 0x2ea   : > { %s1063_s17 = scalar_lea.hbm %s1469_s23, 256  ;;  %s1067_s19 = scalar_lea.hbm %s1521_s7, 512 }
 0x2eb   : > { %p1064_p8 = scmp.ne.s32.totalorder %s1469_s23, %s1063_s17  ;;  %p1068_p1 = scmp.lt.u32.totalorder %s1469_s23, %s1521_s7 }
 0x2ec   : > { %p1069_p0 = scmp.lt.u32.totalorder %s1067_s19, %s1063_s17  ;;  %p1071_p6 = scmp.lt.u32.totalorder %s1063_s17, %s1469_s23 }
 0x2ed   : > { %p1065_p11 = pnand %p1064_p8, %p1533_p9 }
 0x2ee   : > { %p1070_p5 = por %p1069_p0, %p1068_p1 }
 0x2ef   : > { %p1066_p13 = pneg %p1065_p11 }
 0x2f0   : > { %p1072_p10 = por %p1071_p6, %p1070_p5 }
 0x2f2   : > { %p1073_p12 = pnand %p1072_p10, %p1066_p13 }
 0x2f4   : > { %1076 = shalt.err (!%p1073_p12)
}
 0x2f5   : > { %s1122_s21 = smov 128   ;;  %s1123_s22 = smov 8  }
 0x2f6   : > { %970 = dma.vmem_to_hbm [thread:$0]  (%p1533_p9), %s1471_s13, 256, %s1469_s23, %s1473_s29, %s1122_s21, %s1122_s21, %s1123_s22  }
 0x2f7 PF: > { %p982_p2 = scmp.ge.s32.totalorder %s1115_s27, 2  ;;  %s725_s28 = sand.u32 1, %s1103_s24  }
 0x2f8   : > { %p1534_p3 = scmp.ne.s32.totalorder %s1526_s12, 0  ;;  %s726_s8 = scalar_lea.sflag [#allocation4], %s725_s28 }
 0x2fa   : > { %p977_p4 = pnand %p982_p2, %p1534_p3 }
 0x2fc   : > { %1098 = dma.done.wait (!%p977_p4), %s726_s8, 256  }
 0x2fd   : > { %1100 = vsyncadd (!%p977_p4), %s726_s8, 4294967040  ;;  %p18_p7 = scmp.ge.s32.totalorder %s1189_s30, 4   ;;  %s1535_s24 = smov %s1107_s25 }
 0x2fe   : > { %s1536_s25 = smov %s1111_s26  ;;  %s1537_s26 = smov %s1200_s10 }
 0x2ff   : > { %s1538_s27 = smov %s1189_s30  ;;  %20 = sbr.rel (!%p18_p7) target bundleno = 4 (0x4), region = 88 }
 0x306   :  { %731 = vsyncpa [#allocation3], 1 }
 0x307   :  { %733 = vsyncpa [#allocation3 + $0x1], 1 }
 0x308   :  { %734 = vsyncpa [#allocation4], 1 }
 0x309   :  { %736 = vsyncpa [#allocation4 + $0x1], 1 }

</bundles_post_ra>
